<compile_context>
chip_gen: v7x
topology: tpu7x:2x2x1
jax: 0.10.0
libtpu: 0.0.40
codegen_flags: <defaults>
</compile_context>

<pallas_src>
import jax
import jax.numpy as jnp
from jax import lax
from jax.experimental import pallas as pl
from jax.experimental.pallas import tpu as pltpu


def skip_connection_kernel(x_lhs_ref, w_ref, x_res_ref, b_ref, o_ref, acc_ref):
    """One (i, j, k) grid step of  o = x + x @ W_sn^T + b.

    x_lhs_ref : (tm, tk)  LHS tile of x for reduction step k
    w_ref     : (tn, tk)  tile of W_sn (rows = out features, cols = in features)
    x_res_ref : (tm, tn)  residual tile of x matching the output tile
    b_ref     : (1,  tn)  bias tile
    o_ref     : (tm, tn)  output tile
    acc_ref   : (tm, tn)  f32 accumulator scratch, resident across the k axis
    """
    k = pl.program_id(2)

    @pl.when(k == 0)
    def _():
        acc_ref[...] = jnp.zeros_like(acc_ref)

    # (tm, tk) contracted with (tn, tk) on its second axis -> (tm, tn).
    # The Linear's transpose is expressed in the contraction, no data movement.
    acc_ref[...] += lax.dot_general(
        x_lhs_ref[...], w_ref[...],
        dimension_numbers=(((1,), (1,)), ((), ())),
        preferred_element_type=jnp.float32)

    @pl.when(k == pl.num_programs(2) - 1)
    def _():
        # Single fused epilogue: residual + bias + cast + store.
        o_ref[...] = (acc_ref[...]
                      + x_res_ref[...].astype(jnp.float32)
                      + b_ref[...].astype(jnp.float32)).astype(o_ref.dtype)


def _pick_tile(dim, candidates):
    for c in candidates:
        if dim % c == 0:
            return c
    return dim


def skip_connection_forward(x, w_sn, b, *, tm=None, tn=None, tk=None):
    """x: (B, D), w_sn: (D, D) spectrally-normalized weight, b: (D,)."""
    B, D = x.shape
    assert w_sn.shape == (D, D) and b.shape == (D,), "skip connection needs in_dim == out_dim"

    # Pad to lane/sublane-dense shapes: B -> multiple of 8, D -> multiple of 128.
    Bp = -(-B // 8) * 8
    Dp = -(-D // 128) * 128
    xp = x if (Bp == B and Dp == D) else jnp.pad(x, ((0, Bp - B), (0, Dp - D)))
    wp = w_sn if Dp == D else jnp.pad(w_sn, ((0, Dp - D), (0, Dp - D)))
    bp = (b if Dp == D else jnp.pad(b, (0, Dp - D))).reshape(1, Dp)

    tm = tm or _pick_tile(Bp, (256, 128, 64, 32, 16, 8))
    tn = tn or _pick_tile(Dp, (512, 256, 128))
    tk = tk or _pick_tile(Dp, (512, 256, 128))
    grid = (Bp // tm, Dp // tn, Dp // tk)

    # VMEM budget: double-buffered input tiles + double-buffered output tile
    # + f32 accumulator, with 2x headroom, clamped under v7x's 64 MiB physical.
    isz = xp.dtype.itemsize
    est = (2 * (tm * tk + tn * tk + tm * tn + tn) * isz   # inputs, 2 buffers each
           + 2 * tm * tn * isz                            # output, 2 buffers
           + tm * tn * 4)                                 # f32 accumulator
    vmem_limit = int(min(max(2 * est, 4 << 20), 48 << 20))

    out_p = pl.pallas_call(
        skip_connection_kernel,
        out_shape=jax.ShapeDtypeStruct((Bp, Dp), x.dtype),
        grid_spec=pltpu.PrefetchScalarGridSpec(
            num_scalar_prefetch=0,
            grid=grid,
            in_specs=[
                pl.BlockSpec((tm, tk), lambda i, j, k: (i, k)),   # x as matmul LHS
                pl.BlockSpec((tn, tk), lambda i, j, k: (j, k)),   # W_sn (transpose folded in)
                pl.BlockSpec((tm, tn), lambda i, j, k: (i, j)),   # x as residual
                pl.BlockSpec((1, tn), lambda i, j, k: (0, j)),    # bias
            ],
            out_specs=pl.BlockSpec((tm, tn), lambda i, j, k: (i, j)),
            scratch_shapes=[pltpu.VMEM((tm, tn), jnp.float32)],
        ),
        compiler_params=pltpu.CompilerParams(
            dimension_semantics=("parallel", "parallel", "arbitrary"),
            vmem_limit_bytes=vmem_limit,
        ),
    )(xp, wp, xp, bp)

    return out_p[:B, :D] if (Bp != B or Dp != D) else out_p


def spectral_normalize(w, u, n_power_iterations=1, eps=1e-12):
    """Mirror torch.nn.utils.spectral_norm's power iteration (plain-JAX glue)."""
    v = None
    for _ in range(n_power_iterations):
        v = w.T @ u
        v = v / jnp.maximum(jnp.linalg.norm(v), eps)
        u = w @ v
        u = u / jnp.maximum(jnp.linalg.norm(u), eps)
    sigma = u @ (w @ v)
    return w / sigma


if __name__ == "__main__":
    key = jax.random.PRNGKey(0)
    B, D = 8, 256                   # lane-dense: B multiple of 8, D multiple of 128

    k_x, k_w, k_b, k_u = jax.random.split(key, 4)
    x = jax.random.normal(k_x, (B, D), dtype=jnp.float32)

    # Deterministic synthetic Linear parameters (Kaiming-uniform-like range).
    bound = 1.0 / jnp.sqrt(D)
    w = jax.random.uniform(k_w, (D, D), minval=-bound, maxval=bound, dtype=jnp.float32)
    b = jax.random.uniform(k_b, (D,), minval=-bound, maxval=bound, dtype=jnp.float32)
    u0 = jax.random.normal(k_u, (D,), dtype=jnp.float32)
    u0 = u0 / jnp.maximum(jnp.linalg.norm(u0), 1e-12)

    w_sn = spectral_normalize(w, u0, n_power_iterations=1)

    # tn=tk=128 at D=256 exercises the multi-step (1, 2, 2) pipelined grid.
    out = skip_connection_forward(x, w_sn, b, tm=8, tn=128, tk=128)
    out = jax.block_until_ready(out)

    # Reference check against plain-JAX forward of the same semantics.
    ref = x + x @ w_sn.T + b
    assert jnp.allclose(out, ref, atol=1e-5, rtol=1e-5)

    print("KERNEL_OK")
</pallas_src>

<mosaic_0001>
module attributes {stable_mosaic.version = 11 : i64} {
  func.func @skip_connection_kernel(%arg0: i32, %arg1: i32, %arg2: i32, %arg3: memref<8x128xf32, #tpu.memory_space<vmem>>, %arg4: memref<128x128xf32, #tpu.memory_space<vmem>>, %arg5: memref<8x128xf32, #tpu.memory_space<vmem>>, %arg6: memref<1x128xf32, #tpu.memory_space<vmem>>, %arg7: memref<8x128xf32, #tpu.memory_space<vmem>>, %arg8: memref<8x128xf32, #tpu.memory_space<vmem>>) attributes {dimension_semantics = [#tpu.dimension_semantics<parallel>, #tpu.dimension_semantics<parallel>, #tpu.dimension_semantics<arbitrary>], iteration_bounds = array<i64: 1, 2, 2>, scalar_prefetch = 0 : i64, scratch_operands = 1 : i64, tpu.core_type = #tpu.core_type<tc>, window_params = [{transform_indices = @transform_0, window_bounds = array<i64: 8, 128>}, {transform_indices = @transform_1, window_bounds = array<i64: 128, 128>}, {transform_indices = @transform_2, window_bounds = array<i64: 8, 128>}, {transform_indices = @transform_3, window_bounds = array<i64: 1, 128>}, {transform_indices = @transform_4, window_bounds = array<i64: 8, 128>}]} {
    %c0_i32 = arith.constant 0 : i32
    %0 = arith.cmpi eq, %arg2, %c0_i32 : i32
    %1 = arith.extui %0 : i1 to i32
    %c0_i32_0 = arith.constant 0 : i32
    %2 = arith.cmpi ne, %1, %c0_i32_0 : i32
    scf.if %2 {
      %cst_9 = arith.constant 0.000000e+00 : f32
      %12 = vector.broadcast %cst_9 : f32 to vector<8x128xf32>
      %c0_10 = arith.constant 0 : index
      %c0_11 = arith.constant 0 : index
      %13 = vector.load %arg8[%c0_10, %c0_11] : memref<8x128xf32, #tpu.memory_space<vmem>>, vector<8x128xf32>
      tpu.vector_store %arg8[%c0_10, %c0_11], %12 {strides = array<i32>} : memref<8x128xf32, #tpu.memory_space<vmem>>, vector<8x128xf32>,
    } else {
    }
    %c0 = arith.constant 0 : index
    %c0_1 = arith.constant 0 : index
    %3 = vector.load %arg8[%c0, %c0_1] : memref<8x128xf32, #tpu.memory_space<vmem>>, vector<8x128xf32>
    %c0_2 = arith.constant 0 : index
    %c0_3 = arith.constant 0 : index
    %4 = vector.load %arg3[%c0_2, %c0_3] : memref<8x128xf32, #tpu.memory_space<vmem>>, vector<8x128xf32>
    %c0_4 = arith.constant 0 : index
    %c0_5 = arith.constant 0 : index
    %5 = vector.load %arg4[%c0_4, %c0_5] : memref<128x128xf32, #tpu.memory_space<vmem>>, vector<128x128xf32>
    %cst = arith.constant dense<0.000000e+00> : vector<8x128xf32>
    %6 = tpu.matmul %4, %5, %cst {dimension_numbers = #tpu.dot_dimension_numbers<[1], [1], [0], [0], [0, 0, 1, 0], [], []>} : vector<8x128xf32>, vector<128x128xf32>, vector<8x128xf32> -> vector<8x128xf32>
    %7 = arith.addf %3, %6 : vector<8x128xf32>
    %c0_6 = arith.constant 0 : index
    %c0_7 = arith.constant 0 : index
    %8 = vector.load %arg8[%c0_6, %c0_7] : memref<8x128xf32, #tpu.memory_space<vmem>>, vector<8x128xf32>
    tpu.vector_store %arg8[%c0_6, %c0_7], %7 {strides = array<i32>} : memref<8x128xf32, #tpu.memory_space<vmem>>, vector<8x128xf32>,
    %c1_i32 = arith.constant 1 : i32
    %9 = arith.cmpi eq, %arg2, %c1_i32 : i32
    %10 = arith.extui %9 : i1 to i32
    %c0_i32_8 = arith.constant 0 : i32
    %11 = arith.cmpi ne, %10, %c0_i32_8 : i32
    scf.if %11 {
      %c0_9 = arith.constant 0 : index
      %c0_10 = arith.constant 0 : index
      %12 = vector.load %arg8[%c0_9, %c0_10] : memref<8x128xf32, #tpu.memory_space<vmem>>, vector<8x128xf32>
      %c0_11 = arith.constant 0 : index
      %c0_12 = arith.constant 0 : index
      %13 = vector.load %arg5[%c0_11, %c0_12] : memref<8x128xf32, #tpu.memory_space<vmem>>, vector<8x128xf32>
      %14 = arith.addf %12, %13 : vector<8x128xf32>
      %c0_13 = arith.constant 0 : index
      %c0_14 = arith.constant 0 : index
      %15 = vector.load %arg6[%c0_13, %c0_14] : memref<1x128xf32, #tpu.memory_space<vmem>>, vector<1x128xf32>
      %16 = vector.broadcast %15 : vector<1x128xf32> to vector<8x128xf32>
      %17 = arith.addf %14, %16 : vector<8x128xf32>
      %c0_15 = arith.constant 0 : index
      %c0_16 = arith.constant 0 : index
      %18 = vector.load %arg7[%c0_15, %c0_16] : memref<8x128xf32, #tpu.memory_space<vmem>>, vector<8x128xf32>
      tpu.vector_store %arg7[%c0_15, %c0_16], %17 {strides = array<i32>} : memref<8x128xf32, #tpu.memory_space<vmem>>, vector<8x128xf32>,
    } else {
    }
    return
  }
  func.func @transform_0(%arg0: i32, %arg1: i32, %arg2: i32) -> (i32, i32) {
    %c0_i32 = arith.constant 0 : i32
    return %arg0, %arg2 : i32, i32
  }
  func.func @transform_1(%arg0: i32, %arg1: i32, %arg2: i32) -> (i32, i32) {
    %c0_i32 = arith.constant 0 : i32
    return %arg1, %arg2 : i32, i32
  }
  func.func @transform_2(%arg0: i32, %arg1: i32, %arg2: i32) -> (i32, i32) {
    %c0_i32 = arith.constant 0 : i32
    return %arg0, %arg1 : i32, i32
  }
  func.func @transform_3(%arg0: i32, %arg1: i32, %arg2: i32) -> (i32, i32) {
    %c0_i32 = arith.constant 0 : i32
    %c0_i32_0 = arith.constant 0 : i32
    return %c0_i32, %arg1 : i32, i32
  }
  func.func @transform_4(%arg0: i32, %arg1: i32, %arg2: i32) -> (i32, i32) {
    %c0_i32 = arith.constant 0 : i32
    return %arg0, %arg1 : i32, i32
  }
}

</mosaic_0001>

<bundles_post_ra>
// kernel: tpu_custom_call.1
= control target key start
LH: loop header
LB: loop body
LE: loop exit
PB: predicated region body
PF: predicated region fallthrough
CT: control target
= control target key end

     0   :  { %s1577_s0 = inlined_call_operand.hbm [shape: f32[8,256], index: 0, kind: input, shape index: {}]   ;;  %s1578_s1 = inlined_call_operand.hbm [shape: f32[256,256], index: 1, kind: input, shape index: {}]   ;;  %s1579_s2 = inlined_call_operand.hbm [shape: f32[8,256], index: 2, kind: input, shape index: {}]   ;;  %s1580_s3 = inlined_call_operand.vmem [shape: f32[1,256], index: 3, kind: input, shape index: {}]   ;;  %s1581_s4 = inlined_call_operand.hbm [shape: f32[8,256], index: 4, kind: output, shape index: {}]  }
   0x1   :  { %1596 = sst [smem:[#allocation21_spill]] %s1577_s0 }
   0x2   :  { %1597 = sst [smem:[#allocation22_spill]] %s1578_s1 }
   0x3   :  { %1598 = sst [smem:[#allocation23_spill]] %s1581_s4 }
   0x4   :  { %9 = vsyncpa [#allocation4], 0 }
   0x5   :  { %11 = vsyncpa [#allocation4 + $0x1], 0 }
   0x6   :  { %12 = vsyncpa [#allocation7], 0 }
   0x7   :  { %14 = vsyncpa [#allocation7 + $0x1], 0 }
   0x8   :  { %15 = vsyncpa [#allocation5], 0 }
   0x9   :  { %17 = vsyncpa [#allocation5 + $0x1], 0  ;;  %s1132_s15 = smov 0   ;;  %s1134_s16 = smov 0  }
   0xa   :  { %s1136_s17 = smov 0   ;;  %s1138_s18 = smov 0  }
   0xb   :  { %s1140_s19 = smov 0   ;;  %s1142_s20 = smov 0  }
   0xc   :  { %s1144_s21 = smov 0   ;;  %s1146_s22 = smov 0  }
   0xd   :  { %s1148_s23 = smov 0   ;;  %s1150_s24 = smov 0  }
   0xe   :  { %s1152_s25 = smov 0   ;;  %s1154_s26 = smov 0  }
   0xf   :  { %s1156_s27 = smov 0   ;;  %s1158_s28 = smov 0  }
  0x10 LB: > { %1599 = sst [smem:[#allocation14_spill]] %s1074_s23  ;;  %s1582_s29 = sadd.s32 1, %s1086_s26  ;;  %s1094_s28 = sphi %s1158_s28, %s23_s28   ;;  %s1090_s27 = sphi %s1156_s27, %s1643_s27   ;;  %s1086_s26 = sphi %s1154_s26, %s1642_s26   ;;  %s1082_s25 = sphi %s1152_s25, %s1641_s25   ;;  %s1078_s24 = sphi %s1150_s24, %s1652_s24   ;;  %s1074_s23 = sphi %s1148_s23, %s1639_s23   ;;  %s1070_s22 = sphi %s1146_s22, %s1651_s22   ;;  %s1066_s21 = sphi %s1144_s21, %s1650_s21   ;;  %s1062_s20 = sphi %s1142_s20, %s1649_s20   ;;  %s1058_s19 = sphi %s1140_s19, %s1648_s19   ;;  %s1054_s18 = sphi %s1138_s18, %s1647_s18   ;;  %s1050_s17 = sphi %s1136_s17, %s1646_s17   ;;  %s1046_s16 = sphi %s1134_s16, %s1645_s16   ;;  %s1042_s15 = sphi %s1132_s15, %s1644_s15  }
  0x11   : > { %1600 = sst [smem:[#allocation15_spill]] %s1078_s24  ;;  %p1206_p0 = scmp.ge.s32.totalorder %s1582_s29, 2 }
  0x12   : > { %1601 = sst [smem:[#allocation16_spill]] %s1086_s26  ;;  %p1585_p1 = scmp.eq.s32.totalorder %s1094_s28, 0 }
  0x13   : > { %1602 = sst [smem:[#allocation17_spill]] %s1090_s27  ;;  %p86_p2 = scmp.ne.s32.totalorder %s1062_s20, %s1058_s19 }
  0x14   : > { %p1584_p5 = scmp.lt.s32.totalorder %s1094_s28, 4  ;;  %s218_s7 = sand.u32 1, %s1094_s28  }
  0x15   : > { %p88_p4 = por %p86_p2, %p1585_p1  ;;  %s220_s8 = sand.u32 1, %s1062_s20  }
  0x16   : > { %s612_s9 = sshll.u32 %s220_s8, 7  ;;  %s630_s10 = sshll.u32 %s1090_s27, 5 }
  0x17   : > { %s228_s11 = sadd.s32 %s1086_s26, %s630_s10  ;;  %s222_s12 = scalar_lea.vmem [#allocation6], %s612_s9 }
  0x18   : > { %s231_s13 = sshll.u32 %s222_s12, 4  ;;  %s615_s14 = sshll.u32 %s228_s11, 7  ;;  %s1223_s13 = int_to_ptr.vmem [resolvable:$true] %s231_s13 }
  0x19   : > { %s1604_s1 = sld [smem:[#allocation22_spill]]  ;;  %p1232_p6 = pnand %p1584_p5, %p88_p4 }
  0x1a   : > { %s1236_s8 = scalar_lea.sflag [#allocation7], %s218_s7 }
  0x1b   : > { %p852_p8 = pneg %p1232_p6 }
  0x1f   : > { %s1228_s4 = scalar_lea.hbm %s1604_s1, %s615_s14  ;;  %s855_s10 = scalar_lea.hbm %s1604_s1, 8192 }
  0x20   : > { %s850_s9 = scalar_lea.hbm %s1228_s4, 2048  ;;  %p856_p11 = scmp.lt.u32.totalorder %s1228_s4, %s1604_s1 }
  0x21   : > { %p851_p7 = scmp.ne.s32.totalorder %s1228_s4, %s850_s9  ;;  %p857_p12 = scmp.lt.u32.totalorder %s855_s10, %s850_s9 }
  0x22   : > { %p859_p2 = scmp.lt.u32.totalorder %s850_s9, %s1228_s4 }
  0x23   : > { %p853_p9 = pnand %p852_p8, %p851_p7  ;;  %p858_p13 = por %p857_p12, %p856_p11 }
  0x25   : > { %p854_p10 = pneg %p853_p9  ;;  %p860_p4 = por %p859_p2, %p858_p13 }
  0x27   : > { %p861_p5 = pnand %p860_p4, %p854_p10 }
  0x29   : > { %864 = shalt.err (!%p861_p5)
}
  0x2a   : > { %s865_s7 = scalar_lea.vmem %s1223_s13, 2048  ;;  %s1096_s14 = smov [#allocation6]  }
  0x2b   : > { %p866_p7 = scmp.ne.s32.totalorder %s1223_s13, %s865_s7  ;;  %s870_s29 = sshll.u32 %s1096_s14, 4  ;;  %s871_s29 = int_to_ptr.vmem [resolvable:$false] %s870_s29 }
  0x2c   : > { %s872_s30 = scalar_lea.vmem %s871_s29, 4096  ;;  %p873_p1 = scmp.lt.s32.totalorder %s1223_s13, %s871_s29 }
  0x2d   : > { %p868_p9 = pnand %p866_p7, %p852_p8  ;;  %p874_p11 = scmp.lt.s32.totalorder %s872_s30, %s865_s7 }
  0x2f   : > { %p869_p3 = pneg %p868_p9  ;;  %p875_p12 = por %p874_p11, %p873_p1 }
  0x31   : > { %p876_p13 = pnand %p875_p12, %p869_p3 }
  0x33   : > { %879 = shalt.err (!%p876_p13)
}
  0x34   : > { %s1097_s9 = smov 256   ;;  %s1098_s10 = smov 128  }
  0x35   : > { %s1099_s11 = smov 8   ;;  %p618_p1 = scmp.ge.s32.totalorder %s1094_s28, 1 }
  0x36   : > { %721 = dma.hbm_to_vmem [thread:$0]  (!%p1232_p6), %s1228_s4, 2048, %s1223_s13, %s1236_s8, %s1097_s9, %s1098_s10, %s1099_s11  }
  0x37   : > { %p265_p3 = scmp.lt.s32.totalorder %s1094_s28, 5  ;;  %s1271_s7 = sadd.s32 4294967295, %s1094_s28  }
  0x38   : > { %s1607_s14 = sadd.s32 1, %s1086_s26  ;;  %s1609_s29 = sadd.s32 1, %s1090_s27 }
  0x39   : > { %p1266_p5 = pnand %p618_p1, %p265_p3  ;;  %s1654_s14 = smov (%p1206_p0, %s1607_s14), 0 }
  0x3a   : > { %1608 = sst [smem:[#allocation18_spill]] %s1654_s14  ;;  %s1656_s29 = smov (!%p1206_p0, %s1609_s29), %s1090_s27 }
  0x3b   : > { %s1606_s12 = scalar_select %p1266_p5, 1, 0 }
  0x3c   : > { %s47_s4 = ssub.s32 %s1086_s26, %s1654_s14  ;;  %s51_s6 = sadd.s32 1, %s1074_s23 }
  0x3d   : > { %p40_p6 = scmp.ge.s32.totalorder %s1656_s29, 2  ;;  %p49_p8 = scmp.eq.s32.totalorder %s47_s4, 0 }
  0x3e   : > { %p58_p10 = scmp.ne.s32.totalorder %s1074_s23, %s1070_s22  ;;  %p64_p2 = scmp.ne.s32.totalorder %s1070_s22, %s1066_s21 }
  0x3f   : > { %s1658_s29 = smov (%p40_p6, %s1656_s29), 0  ;;  %p1612_p4 = scmp.eq.s32.totalorder %s1094_s28, 0 }
  0x40   : > { %1610 = sst [smem:[#allocation19_spill]] %s1658_s29  ;;  %p1589_p7 = scmp.eq.s32.totalorder %s1271_s7, 0 }
  0x41   : > { %s1294_s13 = scalar_select %p49_p8, %s1074_s23, %s51_s6  }
  0x42   : > { %p1298_p0 = por %p1612_p4, %p58_p10  ;;  %s1305_s30 = ssub.s32 %s1090_s27, %s1658_s29 }
  0x43   : > { %1611 = sst [smem:[#allocation20_spill]] %s1294_s13  ;;  %s198_s9 = sand.u32 1, %s1074_s23  }
  0x44   : > { %p1310_p9 = por %p1589_p7, %p64_p2  ;;  %s76_s10 = sor.u32 %s1305_s30, %s47_s4 }
  0x45   : > { %p77_p11 = scmp.eq.s32.totalorder %s76_s10, 0  ;;  %p1615_p12 = scmp.ne.s32.totalorder %s1058_s19, %s1054_s18 }
  0x46   : > { %s1614_s21 = scalar_select %p1310_p9, 1, 0 }
  0x47   : > { %p1320_p13 = por %p1615_p12, %p1589_p7  ;;  %s610_s6 = sshll.u32 %s198_s9, 3 }
  0x48   : > { %s1617_s1 = sadd.s32 1, %s1062_s20  ;;  %s611_s29 = sshll.u32 %s1086_s26, 7 }
  0x49   : > { %s1616_s11 = scalar_select %p1320_p13, 1, 0 }
  0x4a   : > { %s1327_s14 = scalar_select %p77_p11, %s1062_s20, %s1617_s1  }
  0x4b   : > { %s1618_s0 = sld [smem:[#allocation21_spill]]  ;;  %s202_s4 = scalar_lea.vmem [#allocation3], %s610_s6 }
  0x4c   : > { %s211_s18 = sshll.u32 %s202_s4, 4  ;;  %p1619_p1 = scmp.lt.s32.totalorder %s1094_s28, 4  ;;  %s1335_s18 = int_to_ptr.vmem [resolvable:$true] %s211_s18 }
  0x4d   : > { %s199_s1 = scalar_lea.sflag [#allocation4], %s198_s9 }
  0x4e   : > { %p1341_p3 = pnand %p1619_p1, %p1298_p0 }
  0x50   : > { %p882_p8 = pneg %p1341_p3 }
  0x51   : > { %s1333_s24 = scalar_lea.hbm %s1618_s0, %s611_s29  ;;  %s885_s5 = scalar_lea.hbm %s1618_s0, 256 }
  0x52   : > { %s880_s23 = scalar_lea.hbm %s1333_s24, 128  ;;  %p886_p4 = scmp.lt.u32.totalorder %s1333_s24, %s1618_s0 }
  0x53   : > { %p881_p6 = scmp.ne.s32.totalorder %s1333_s24, %s880_s23  ;;  %p887_p0 = scmp.lt.u32.totalorder %s885_s5, %s880_s23 }
  0x54   : > { %p889_p12 = scmp.lt.u32.totalorder %s880_s23, %s1333_s24 }
  0x55   : > { %p883_p10 = pnand %p882_p8, %p881_p6  ;;  %p888_p11 = por %p887_p0, %p886_p4 }
  0x57   : > { %p884_p2 = pneg %p883_p10  ;;  %p890_p1 = por %p889_p12, %p888_p11 }
  0x59   : > { %p891_p7 = pnand %p890_p1, %p884_p2 }
  0x5b   : > { %894 = shalt.err (!%p891_p7)
}
  0x5c   : > { %s895_s9 = scalar_lea.vmem %s1335_s18, 128  ;;  %s1100_s29 = smov [#allocation3]  }
  0x5d   : > { %p896_p6 = scmp.ne.s32.totalorder %s1335_s18, %s895_s9  ;;  %s900_s13 = sshll.u32 %s1100_s29, 4  ;;  %s901_s13 = int_to_ptr.vmem [resolvable:$false] %s900_s13 }
  0x5e   : > { %s902_s6 = scalar_lea.vmem %s901_s13, 256  ;;  %p903_p9 = scmp.lt.s32.totalorder %s1335_s18, %s901_s13 }
  0x5f   : > { %p898_p10 = pnand %p896_p6, %p882_p8  ;;  %p904_p4 = scmp.lt.s32.totalorder %s902_s6, %s895_s9 }
  0x61   : > { %p899_p13 = pneg %p898_p10  ;;  %p905_p0 = por %p904_p4, %p903_p9 }
  0x63   : > { %p906_p11 = pnand %p905_p0, %p899_p13 }
  0x65   : > { %909 = shalt.err (!%p906_p11)
}
  0x66   : > { %718 = dma.hbm_to_vmem [thread:$0]  (!%p1341_p3), %s1333_s24, 128, %s1335_s18, %s199_s1  }
  0x67   : > { %s607_s23 = sadd.s32 4294967294, %s1094_s28   ;;  %p105_p7 = scmp.eq.s32.totalorder %s1305_s30, 0 }
  0x68   : > { %s107_s10 = sadd.s32 1, %s1050_s17  ;;  %p114_p9 = scmp.ne.s32.totalorder %s1050_s17, %s1046_s16 }
  0x69   : > { %p120_p13 = scmp.ne.s32.totalorder %s1046_s16, %s1042_s15  ;;  %p1621_p8 = scmp.eq.s32.totalorder %s1094_s28, 0 }
  0x6a   : > { %s1378_s5 = scalar_select %p105_p7, %s1050_s17, %s107_s10  }
  0x6b   : > { %p116_p2 = por %p114_p9, %p1621_p8  ;;  %p1622_p12 = scmp.eq.s32.totalorder %s1271_s7, 0 }
  0x6c   : > { %p172_p6 = scmp.eq.s32.totalorder %s1271_s7, 3  ;;  %p178_p10 = scmp.eq.s32.totalorder %s607_s23, 3 }
  0x6d   : > { %p1384_p1 = por %p120_p13, %p1622_p12  ;;  %s243_s9 = sand.u32 1, %s1050_s17  }
  0x6e   : > { %s617_s29 = sshll.u32 %s1090_s27, 7  ;;  %p1391_p3 = por %p172_p6, %p114_p9 }
  0x6f   : > { %s1623_s4 = scalar_select %p1384_p1, 1, 0 }
  0x70   : > { %s1624_s24 = scalar_select %p1391_p3, 1, 0 }
  0x71   : > { %p1395_p4 = por %p178_p10, %p120_p13  ;;  %s616_s18 = sshll.u32 %s243_s9, 3 }
  0x72   : > { %s1402_s6 = scalar_lea.hbm %s1579_s2, %s617_s29  ;;  %p1626_p0 = scmp.lt.s32.totalorder %s1094_s28, 4 }
  0x73   : > { %s1625_s30 = scalar_select %p1395_p4, 1, 0 }
  0x74   : > { %p1406_p11 = pnand %p1626_p0, %p116_p2  ;;  %s245_s10 = scalar_lea.vmem [#allocation8], %s616_s18 }
  0x75   : > { %s254_s0 = sshll.u32 %s245_s10, 4  ;;  %s910_s9 = scalar_lea.hbm %s1402_s6, 128  ;;  %s255_s0 = int_to_ptr.vmem [resolvable:$true] %s254_s0 }
  0x76   : > { %p911_p7 = scmp.ne.s32.totalorder %s1402_s6, %s910_s9  ;;  %p912_p9 = pneg %p1406_p11 }
  0x77   : > { %s915_s13 = scalar_lea.hbm %s1579_s2, 256  ;;  %p916_p2 = scmp.lt.u32.totalorder %s1402_s6, %s1579_s2 }
  0x78   : > { %p913_p13 = pnand %p912_p9, %p911_p7  ;;  %p917_p12 = scmp.lt.u32.totalorder %s915_s13, %s910_s9 }
  0x79   : > { %p919_p10 = scmp.lt.u32.totalorder %s910_s9, %s1402_s6 }
  0x7a   : > { %p914_p8 = pneg %p913_p13  ;;  %p918_p6 = por %p917_p12, %p916_p2 }
  0x7c   : > { %p920_p0 = por %p919_p10, %p918_p6 }
  0x7e   : > { %p921_p4 = pnand %p920_p0, %p914_p8 }
  0x80   : > { %924 = shalt.err (!%p921_p4)
}
  0x81   : > { %s925_s18 = scalar_lea.vmem %s255_s0, 128  ;;  %s1101_s10 = smov [#allocation8]  }
  0x82   : > { %p926_p3 = scmp.ne.s32.totalorder %s255_s0, %s925_s18  ;;  %s930_s29 = sshll.u32 %s1101_s10, 4  ;;  %s931_s29 = int_to_ptr.vmem [resolvable:$false] %s930_s29 }
  0x83   : > { %s932_s1 = scalar_lea.vmem %s931_s29, 256  ;;  %p933_p1 = scmp.lt.s32.totalorder %s255_s0, %s931_s29 }
  0x84   : > { %p928_p7 = pnand %p926_p3, %p912_p9  ;;  %p934_p5 = scmp.lt.s32.totalorder %s932_s1, %s925_s18 }
  0x86   : > { %p929_p13 = pneg %p928_p7  ;;  %p935_p2 = por %p934_p5, %p933_p1 }
  0x88   : > { %p936_p12 = pnand %p935_p2, %p929_p13 }
  0x8a   : > { %939 = shalt.err (!%p936_p12)
}
  0x8b   : > { %724 = dma.hbm_to_vmem [thread:$0]  (!%p1406_p11), %s1402_s6, 128, %s255_s0, %s1236_s8  }
  0x8c   : > { %p1628_p4 = scmp.ne.s32.totalorder %s1606_s12, 0 }
  0x8d   : > { %s271_s26 = sand.u32 (!%p1628_p4), 1, %s1070_s22   ;;  %p1629_p3 = scmp.ne.s32.totalorder (!%p1628_p4), %s1614_s21, 0 }
  0x8e   : > { %269 = sbr.rel (%p1628_p4) target bundleno = 494 (0x1ee), region = 36  ;;  %s1435_s27 = sshll.u32 (!%p1628_p4), %s271_s26, 3 }
  0x8f   : > { %s272_s9 = scalar_lea.sflag (!%p1628_p4), [#allocation4], %s271_s26  ;;  %s275_s13 = scalar_lea.vmem (!%p1628_p4), [#allocation3], %s1435_s27 }
  0x95   : > { %1025 = dma.done.wait (%p1629_p3), %s272_s9, 128  }
  0x96   : > { %1027 = vsyncadd (%p1629_p3), %s272_s9, 4294967168  ;;  %s280_s0 = sand.u32 1, %s1271_s7   ;;  %s282_s8 = sand.u32 1, %s1058_s19  }
  0x97   : > { %s620_s12 = sshll.u32 %s282_s8, 7  ;;  %s281_s6 = scalar_lea.sflag [#allocation7], %s280_s0 }
  0x98   : > { %s1444_s23 = scalar_lea.vmem [#allocation6], %s620_s12  ;;  %p1630_p5 = scmp.ne.s32.totalorder %s1616_s11, 0 }
  0x9a   : > { %1029 = dma.done.wait (%p1630_p5), %s281_s6, 2048  }
  0x9b   : > { %1031 = vsyncadd (%p1630_p5), %s281_s6, 4294965248  ;;  %s291_s18 = sand.u32 1, %s1046_s16   ;;  %p1631_p1 = scmp.ne.s32.totalorder %s1623_s4, 0 }
  0x9c   : > { %s1453_s21 = sshll.u32 %s291_s18, 3 }
  0x9d   : > { %s293_s10 = scalar_lea.vmem [#allocation8], %s1453_s21 }
  0x9e   : > { %1033 = dma.done.wait (%p1631_p1), %s281_s6, 128  }
  0x9f   : > { %1035 = vsyncadd (%p1631_p1), %s281_s6, 4294967168  ;;  %p332_p11 = scmp.lt.s32.totalorder %s1082_s25, 1  ;;  %s330_s26 = scalar_lea.vmem [#allocation9], %s1453_s21 }
  0xa0   : > { %s1632_s9 = sld [smem:[#allocation15_spill]] }
  0xa1   : > { %s1462_s7 = scalar_select %p332_p11, %s1082_s25, 1 }
  0xa3   : > { %s334_s1 = scalar_lea.vmem %s1580_s3, %s1462_s7 }
  0xa6   : > { %p623_p9 = scmp.ne.s32.totalorder %s1632_s9, 0 }
  0xa7   : > { %v1102_v0 = vmov (!%p623_p9), 0.0  }
  0xa8   : > { %338 = sbr.rel (%p623_p9) target bundleno = 175 (0xaf), region = 52  ;;  %339 = vst [vmem:[#allocation2] sm:$0xff] (!%p623_p9), %v1102_v0 }
  0xaf PF: > { %v342_v1 = vld [vmem:[%s1444_s23] sm:$0xff]  ;;  %v343_v2 = vld [vmem:[%s1444_s23 + $0x8] sm:$0xff]  ;;  %v1103_v3 = vmov 0.0|0.0   ;;  %vm1104_vm0 = vmmov 0   ;;  %v1105_v5 = vmov 0.0   ;;  %v344_v6 = vld [vmem:[%s1444_s23 + $0x10] sm:$0xff] }
  0xb0   : > { %683 = vmatprep.subr.bf16.mxu0 %v1103_v3  ;;  %v684_v4 = vpack.c.bf16 %v343_v2, %v342_v1  ;;  %680 = vmatprep.mubr.msk.f32.mxu0 %vm1104_vm0, %v1105_v5  ;;  %v345_v7 = vld [vmem:[%s1444_s23 + $0x18] sm:$0xff]  ;;  %v346_v9 = vld [vmem:[%s1444_s23 + $0x20] sm:$0xff]  ;;  %v347_v10 = vld [vmem:[%s1444_s23 + $0x28] sm:$0xff]  ;;  %s1633_s4 = sld [smem:[#allocation15_spill]] }
  0xb1   : > { %v687_v8 = vpack.c.bf16 %v345_v7, %v344_v6  ;;  %v690_v11 = vpack.c.bf16 %v347_v10, %v346_v9  ;;  %v348_v12 = vld [vmem:[%s1444_s23 + $0x30] sm:$0xff]  ;;  %v349_v13 = vld [vmem:[%s1444_s23 + $0x38] sm:$0xff]  ;;  %v350_v15 = vld [vmem:[%s1444_s23 + $0x40] sm:$0xff] }
  0xb2   : > { %685 = vmatpush3.bf16.xpose.msra.mxu0 %v684_v4  ;;  %v693_v14 = vpack.c.bf16 %v349_v13, %v348_v12  ;;  %v351_v16 = vld [vmem:[%s1444_s23 + $0x48] sm:$0xff]  ;;  %v352_v18 = vld [vmem:[%s1444_s23 + $0x50] sm:$0xff]  ;;  %v353_v19 = vld [vmem:[%s1444_s23 + $0x58] sm:$0xff] }
  0xb3   : > { %686 = vmatprep.subr.bf16.mxu0 %v1103_v3  ;;  %v696_v17 = vpack.c.bf16 %v351_v16, %v350_v15  ;;  %v699_v20 = vpack.c.bf16 %v353_v19, %v352_v18  ;;  %v354_v21 = vld [vmem:[%s1444_s23 + $0x60] sm:$0xff]  ;;  %v355_v22 = vld [vmem:[%s1444_s23 + $0x68] sm:$0xff]  ;;  %v356_v24 = vld [vmem:[%s1444_s23 + $0x70] sm:$0xff] }
  0xb4   : > { %v702_v23 = vpack.c.bf16 %v355_v22, %v354_v21  ;;  %v357_v25 = vld [vmem:[%s1444_s23 + $0x78] sm:$0xff]  ;;  %v340_v28 = vld [vmem:[#allocation2] sm:$0xff] }
  0xb5   : > { %v705_v26 = vpack.c.bf16 %v357_v25, %v356_v24  ;;  %v341_v27 = vld [vmem:[%s275_s13] sm:$0xff] }
  0xb6   : > { %p624_p8 = scmp.ne.s32.totalorder %s1633_s4, 1 }
  0xb7   : > { %v435_v33 = vld [vmem:[%s293_s10] sm:$0xff] (!%p624_p8) }
  0xb8   : > { %v625_v34 = vld [vmem:[%s334_s1] ss:$0 sm:$0xff] (!%p624_p8) }
  0xba   : > { %688 = vmatpush3.bf16.xpose.msra.mxu0 %v687_v8 }
  0xbb   : > { %689 = vmatprep.subr.bf16.mxu0 %v1103_v3 }
  0xc2   : > { %691 = vmatpush3.bf16.xpose.msra.mxu0 %v690_v11 }
  0xc3   : > { %692 = vmatprep.subr.bf16.mxu0 %v1103_v3 }
  0xca   : > { %694 = vmatpush3.bf16.xpose.msra.mxu0 %v693_v14 }
  0xcb   : > { %695 = vmatprep.subr.bf16.mxu0 %v1103_v3 }
  0xd2   : > { %697 = vmatpush3.bf16.xpose.msra.mxu0 %v696_v17 }
  0xd3   : > { %698 = vmatprep.subr.bf16.mxu0 %v1103_v3 }
  0xda   : > { %700 = vmatpush3.bf16.xpose.msra.mxu0 %v699_v20 }
  0xdb   : > { %701 = vmatprep.subr.bf16.mxu0 %v1103_v3 }
  0xe2   : > { %703 = vmatpush3.bf16.xpose.msra.mxu0 %v702_v23 }
  0xe3   : > { %704 = vmatprep.subr.bf16.mxu0 %v1103_v3 }
  0xea   : > { %706 = vmatpush3.bf16.xpose.msra.mxu0 %v705_v26 }
  0xf1   : > { %681 = vmatmul.mubr.f32.vlgmr.msra.gmra.mrb[0].mxu0 %v341_v27 }
 0x1c1   : > { %433 = sbr.rel (%p624_p8) target bundleno = 468 (0x1d4), region = 56 }
 0x1c4   : > { %v424_v29 = vpop.f32.mrb[0].mxu0 }
 0x1c5   : > { %v428_v30 = vadd.f32 %v424_v29, %v340_v28  ;;  %v682_v31 = vpop.f32.mrb[1].mxu0 }
 0x1c7   : > { %429 = vst [vmem:[#allocation2] sm:$0xff] %v428_v30 }
 0x1ce   : > { %v434_v32 = vld [vmem:[#allocation2] sm:$0xff] }
 0x1cf   : > { %v436_v35 = vadd.f32 %v435_v33, %v434_v32 }
 0x1d1   : > { %v444_v36 = vadd.f32 %v625_v34, %v436_v35 }
 0x1d3   : > { %445 = vst [vmem:[%s330_s26] sm:$0xff] %v444_v36 }
 0x1d4 PF: > { %s627_s27 = sshll.u32 %s1082_s25, 7  ;;  %s1634_s6 = sld [smem:[#allocation23_spill]] }
 0x1d5   : > { %s462_s10 = sshll.u32 %s330_s26, 4  ;;  %s447_s7 = scalar_lea.sflag [#allocation5], %s291_s18  ;;  %s463_s10 = int_to_ptr.vmem [resolvable:$true] %s462_s10 }
 0x1d6   : > { %s940_s11 = scalar_lea.vmem %s463_s10, 128  ;;  %p1635_p10 = scmp.ne.s32.totalorder %s1624_s24, 0 }
 0x1d7   : > { %p941_p6 = scmp.ne.s32.totalorder %s463_s10, %s940_s11  ;;  %s1106_s29 = smov [#allocation9]  }
 0x1d8   : > { %s944_s1 = sshll.u32 %s1106_s29, 4  ;;  %s945_s1 = int_to_ptr.vmem [resolvable:$false] %s944_s1 }
 0x1d9   : > { %p942_p0 = pnand %p941_p6, %p1635_p10  ;;  %s946_s9 = scalar_lea.vmem %s945_s1, 256 }
 0x1da   : > { %s1502_s23 = scalar_lea.hbm %s1634_s6, %s627_s27  ;;  %p947_p13 = scmp.lt.s32.totalorder %s463_s10, %s945_s1 }
 0x1db   : > { %p943_p7 = pneg %p942_p0  ;;  %p948_p2 = scmp.lt.s32.totalorder %s946_s9, %s940_s11 }
 0x1dd   : > { %p949_p12 = por %p948_p2, %p947_p13 }
 0x1df   : > { %p950_p4 = pnand %p949_p12, %p943_p7 }
 0x1e1   : > { %953 = shalt.err (!%p950_p4)
}
 0x1e2   : > { %s954_s25 = scalar_lea.hbm %s1502_s23, 128  ;;  %s958_s26 = scalar_lea.hbm %s1634_s6, 256 }
 0x1e3   : > { %p955_p3 = scmp.ne.s32.totalorder %s1502_s23, %s954_s25  ;;  %p959_p11 = scmp.lt.u32.totalorder %s1502_s23, %s1634_s6 }
 0x1e4   : > { %p960_p9 = scmp.lt.u32.totalorder %s958_s26, %s954_s25  ;;  %p962_p6 = scmp.lt.u32.totalorder %s954_s25, %s1502_s23 }
 0x1e5   : > { %p956_p5 = pnand %p955_p3, %p1635_p10 }
 0x1e6   : > { %p961_p8 = por %p960_p9, %p959_p11 }
 0x1e7   : > { %p957_p1 = pneg %p956_p5 }
 0x1e8   : > { %p963_p0 = por %p962_p6, %p961_p8 }
 0x1ea   : > { %p964_p7 = pnand %p963_p0, %p957_p1 }
 0x1ec   : > { %967 = shalt.err (!%p964_p7)
}
 0x1ed   : > { %713 = dma.vmem_to_hbm [thread:$0]  (%p1635_p10), %s463_s10, 128, %s1502_s23, %s447_s7  }
 0x1ee PF: > { %p730_p13 = scmp.ge.s32.totalorder %s1094_s28, 2  ;;  %s474_s8 = sand.u32 1, %s1042_s15  }
 0x1ef   : > { %p1636_p2 = scmp.ne.s32.totalorder %s1625_s30, 0  ;;  %s475_s27 = scalar_lea.sflag [#allocation5], %s474_s8 }
 0x1f1   : > { %p726_p12 = pnand %p730_p13, %p1636_p2 }
 0x1f3   : > { %1037 = dma.done.wait (!%p726_p12), %s475_s27, 128  }
 0x1f4   : > { %1039 = vsyncadd (!%p726_p12), %s475_s27, 4294967168  ;;  %s23_s28 = sadd.s32 1, %s1094_s28   ;;  %s1638_s24 = sld [smem:[#allocation14_spill]] }
 0x1f5   : > { %p1530_p4 = scmp.ge.s32.totalorder %s23_s28, 6   ;;  %s1639_s23 = sld [smem:[#allocation20_spill]] }
 0x1f6   : > { %s1640_s30 = sld [smem:[#allocation16_spill]]  ;;  %s1641_s25 = sld [smem:[#allocation17_spill]] }
 0x1f7   : > { %s1642_s26 = sld [smem:[#allocation18_spill]]  ;;  %s1643_s27 = sld [smem:[#allocation19_spill]] }
 0x1f8   : > { %s1644_s15 = smov %s1046_s16  ;;  %s1645_s16 = smov %s1050_s17 }
 0x1f9   : > { %s1646_s17 = smov %s1378_s5  ;;  %s1647_s18 = smov %s1058_s19 }
 0x1fa   : > { %s1648_s19 = smov %s1062_s20  ;;  %s1649_s20 = smov %s1327_s14 }
 0x1fb   : > { %s1650_s21 = smov %s1070_s22  ;;  %s1651_s22 = smov %s1638_s24 }
 0x1fc   : > { %s1652_s24 = smov %s1640_s30  ;;  %22 = sbr.rel (!%p1530_p4) target bundleno = 16 (0x10), region = 116 }
 0x203   :  { %480 = vsyncpa [#allocation4], 1 }
 0x204   :  { %482 = vsyncpa [#allocation4 + $0x1], 1 }
 0x205   :  { %483 = vsyncpa [#allocation7], 1 }
 0x206   :  { %485 = vsyncpa [#allocation7 + $0x1], 1 }
 0x207   :  { %486 = vsyncpa [#allocation5], 1 }
 0x208   :  { %488 = vsyncpa [#allocation5 + $0x1], 1 }

</bundles_post_ra>
